<compile_context>
chip_gen: v6e
topology: v6e:2x2x1
jax: 0.10.0
libtpu: 0.0.40
codegen_flags: <defaults>
</compile_context>

<pallas_src>
import jax
import jax.numpy as jnp
from jax.experimental import pallas as pl
from jax.experimental.pallas import tpu as pltpu

_MIB = 1 << 20


def _vmem_cap_bytes():
    try:
        return int(pltpu.get_tpu_info().vmem_capacity_bytes)
    except Exception:
        return 64 * _MIB  # conservative default (v7x per-TC VMEM)


def _round_up(x, m):
    return -(-x // m) * m


# ----------------------------------------------------------------------------
# Standalone PositionalEmbedding.forward: broadcast the table to (B, L, D).
# ----------------------------------------------------------------------------
def _pe_broadcast_kernel(w_ref, o_ref):
    # w_ref: (1, tl)  slice of the flattened PE table (lane-dense)
    # o_ref: (bt, tl) lane-dense output block
    o_ref[...] = jnp.broadcast_to(w_ref[...], o_ref.shape)


def _choose_bcast_tiles(batch, lane_len, itemsize, target_block_bytes):
    # Lane tile: full row if it fits, otherwise a multiple of 128 that bounds
    # the block bytes (so huge max_len*d_model rows never exceed the budget).
    if lane_len * itemsize <= target_block_bytes or lane_len <= 128:
        tl = lane_len
    else:
        tl = min(lane_len, max(128, (target_block_bytes // (itemsize * 128)) * 128))
    row_bytes = tl * itemsize
    total_bytes = batch * lane_len * itemsize

    # Batch tile: balanced steps, each block <= ~target, and >= 2 steps when
    # there is enough work that both v7x TensorCores should be writing.
    max_rows = max(1, target_block_bytes // row_bytes)
    min_steps = 2 if (total_bytes >= 8 * _MIB and batch >= 2) else 1
    steps = max(min_steps, pl.cdiv(batch, max_rows))
    bt = pl.cdiv(batch, steps)
    if bt >= batch:
        bt = batch                                   # full-batch block: always legal
    else:
        bt = min(batch, max(8, _round_up(bt, 8)))    # 8-row aligned blocks
    return bt, tl


def positional_embedding_forward(x, pe_weight, *, force_pallas=False,
                                 target_block_bytes=16 * _MIB):
    """Returns pe_weight broadcast to (batch, max_len, d_model).

    x: any array whose leading dim is the batch size (values unused, exactly
       like the PyTorch module).  pe_weight: (max_len, d_model).
    """
    batch = x.shape[0]
    max_len, d_model = pe_weight.shape
    lane_len = max_len * d_model
    itemsize = jnp.dtype(pe_weight.dtype).itemsize
    out_bytes = batch * lane_len * itemsize

    # Fast path: for small outputs a fused XLA broadcast is strictly faster
    # than a custom-call launch plus per-grid-step overhead.
    if out_bytes < 2 * _MIB and not force_pallas:
        return jnp.broadcast_to(pe_weight[None, :, :], (batch, max_len, d_model))

    bt, tl = _choose_bcast_tiles(batch, lane_len, itemsize, target_block_bytes)
    grid = (pl.cdiv(batch, bt), pl.cdiv(lane_len, tl))

    w_flat = pe_weight.reshape(1, lane_len)          # lane-dense table

    blk_bytes = bt * tl * itemsize
    w_blk_bytes = tl * itemsize
    cap = _vmem_cap_bytes()
    vmem_needed = 2 * blk_bytes + 2 * w_blk_bytes + 2 * _MIB
    vmem_limit = int(min(max(vmem_needed, 4 * _MIB), int(0.75 * cap)))

    out2d = pl.pallas_call(
        _pe_broadcast_kernel,
        out_shape=jax.ShapeDtypeStruct((batch, lane_len), pe_weight.dtype),
        grid_spec=pltpu.PrefetchScalarGridSpec(
            num_scalar_prefetch=0,
            grid=grid,
            in_specs=[pl.BlockSpec((1, tl), lambda b, l: (0, l))],
            out_specs=pl.BlockSpec((bt, tl), lambda b, l: (b, l)),
        ),
        compiler_params=pltpu.CompilerParams(
            dimension_semantics=("parallel", "parallel"),
            vmem_limit_bytes=vmem_limit,
        ),
        cost_estimate=pl.CostEstimate(
            flops=0,
            transcendentals=0,
            bytes_accessed=int(lane_len * itemsize + out_bytes),
        ),
    )(w_flat)

    # (batch, L) -> (batch, max_len, d_model): contiguous row-major reshape.
    return out2d.reshape(batch, max_len, d_model)


# ----------------------------------------------------------------------------
# Fused consumer: embedding = x_token + PositionalEmbedding(x)
# (the big win — the (B, L, D) broadcast is never materialized in HBM).
# ----------------------------------------------------------------------------
def _pe_add_kernel(x_ref, w_ref, o_ref):
    # x_ref/o_ref: (bt, tL, D); w_ref: (1, tL, D) PE slice, broadcast over batch.
    o_ref[...] = (x_ref[...] + w_ref[...]).astype(o_ref.dtype)


def add_positional_embedding(x_token, pe_weight, *, target_block_bytes=8 * _MIB):
    """Computes x_token + pe_weight[None] with the PE table resident in VMEM."""
    batch, max_len, d_model = x_token.shape
    assert pe_weight.shape == (max_len, d_model)
    itemsize = jnp.dtype(x_token.dtype).itemsize

    # Seq tile (multiple of 8 or full) and batch tile bounding the block bytes.
    row_bytes = d_model * itemsize
    if max_len * row_bytes <= target_block_bytes or max_len <= 8:
        tL = max_len
    else:
        tL = min(max_len, max(8, (target_block_bytes // (row_bytes * 8)) * 8))
    plane_bytes = tL * row_bytes
    bt = int(min(batch, max(1, target_block_bytes // plane_bytes)))

    grid = (pl.cdiv(batch, bt), pl.cdiv(max_len, tL))
    w3 = pe_weight.reshape(1, max_len, d_model)

    blk_bytes = bt * tL * row_bytes
    w_blk_bytes = tL * row_bytes
    cap = _vmem_cap_bytes()
    vmem_needed = 4 * blk_bytes + 2 * w_blk_bytes + 2 * _MIB  # x + out double-buffered
    vmem_limit = int(min(max(vmem_needed, 4 * _MIB), int(0.75 * cap)))

    out = pl.pallas_call(
        _pe_add_kernel,
        out_shape=jax.ShapeDtypeStruct((batch, max_len, d_model), x_token.dtype),
        grid_spec=pltpu.PrefetchScalarGridSpec(
            num_scalar_prefetch=0,
            grid=grid,
            in_specs=[
                pl.BlockSpec((bt, tL, d_model), lambda b, l: (b, l, 0)),
                pl.BlockSpec((1, tL, d_model), lambda b, l: (0, l, 0)),
            ],
            out_specs=pl.BlockSpec((bt, tL, d_model), lambda b, l: (b, l, 0)),
        ),
        compiler_params=pltpu.CompilerParams(
            dimension_semantics=("parallel", "parallel"),
            vmem_limit_bytes=vmem_limit,
        ),
        cost_estimate=pl.CostEstimate(
            flops=int(batch * max_len * d_model),
            transcendentals=0,
            bytes_accessed=int(2 * batch * max_len * d_model * itemsize
                               + max_len * d_model * itemsize),
        ),
    )(x_token, w3)
    return out


if __name__ == "__main__":
    key = jax.random.PRNGKey(0)
    k_w, k_x, k_t = jax.random.split(key, 3)

    # Small shapes consistent with the module: seq (max_len) = 8, hidden (d_model) = 32.
    batch, max_len, d_model = 2, 8, 32

    # nn.Embedding default init: weight ~ N(0, 1)
    pe_weight = jax.random.normal(k_w, (max_len, d_model), dtype=jnp.float32)
    # Dummy input: only its batch dimension matters (values unused by forward).
    x = jax.random.normal(k_x, (batch, max_len), dtype=jnp.float32)

    ref = jnp.broadcast_to(pe_weight[None, :, :], (batch, max_len, d_model))

    # 1) Fast path (tiny output -> fused XLA broadcast, no kernel launch).
    out_fast = jax.block_until_ready(positional_embedding_forward(x, pe_weight))
    assert out_fast.shape == (batch, max_len, d_model)
    assert jnp.allclose(out_fast, ref)

    # 2) Pallas broadcast path (forced so the kernel is exercised at small shape).
    out_pallas = jax.block_until_ready(
        positional_embedding_forward(x, pe_weight, force_pallas=True))
    assert out_pallas.shape == (batch, max_len, d_model)
    assert jnp.allclose(out_pallas, ref)

    # 3) Multi-row-block Pallas path (batch = 16).
    x16 = jax.random.normal(k_x, (16, max_len), dtype=jnp.float32)
    out16 = jax.block_until_ready(
        positional_embedding_forward(x16, pe_weight, force_pallas=True))
    assert out16.shape == (16, max_len, d_model)
    assert jnp.allclose(out16, jnp.broadcast_to(pe_weight[None], (16, max_len, d_model)))

    # 4) Fused consumer path: embedding = x_token + position(x) (no HBM broadcast).
    x_token = jax.random.normal(k_t, (batch, max_len, d_model), dtype=jnp.float32)
    emb = jax.block_until_ready(add_positional_embedding(x_token, pe_weight))
    assert emb.shape == (batch, max_len, d_model)
    assert jnp.allclose(emb, x_token + pe_weight[None, :, :], atol=1e-6)

    print("KERNEL_OK")
</pallas_src>

<mosaic_0001>
module attributes {stable_mosaic.version = 11 : i64} {
  func.func @_pe_broadcast_kernel(%arg0: i32, %arg1: i32, %arg2: memref<1x256xf32, #tpu.memory_space<vmem>>, %arg3: memref<2x256xf32, #tpu.memory_space<vmem>>) attributes {dimension_semantics = [#tpu.dimension_semantics<parallel>, #tpu.dimension_semantics<parallel>], iteration_bounds = array<i64: 1, 1>, scalar_prefetch = 0 : i64, scratch_operands = 0 : i64, tpu.core_type = #tpu.core_type<tc>, window_params = [{transform_indices = @transform_0, window_bounds = array<i64: 1, 256>}, {transform_indices = @transform_1, window_bounds = array<i64: 2, 256>}]} {
    %c0 = arith.constant 0 : index
    %c0_0 = arith.constant 0 : index
    %0 = vector.load %arg2[%c0, %c0_0] : memref<1x256xf32, #tpu.memory_space<vmem>>, vector<1x256xf32>
    %1 = vector.shape_cast %0 : vector<1x256xf32> to vector<1x256xf32>
    %2 = vector.broadcast %1 : vector<1x256xf32> to vector<2x256xf32>
    %c0_1 = arith.constant 0 : index
    %c0_2 = arith.constant 0 : index
    %3 = vector.load %arg3[%c0_1, %c0_2] : memref<2x256xf32, #tpu.memory_space<vmem>>, vector<2x256xf32>
    tpu.vector_store %arg3[%c0_1, %c0_2], %2 {strides = array<i32>} : memref<2x256xf32, #tpu.memory_space<vmem>>, vector<2x256xf32>,
    return
  }
  func.func @transform_0(%arg0: i32, %arg1: i32) -> (i32, i32) {
    %c0_i32 = arith.constant 0 : i32
    %c0_i32_0 = arith.constant 0 : i32
    return %c0_i32, %arg1 : i32, i32
  }
  func.func @transform_1(%arg0: i32, %arg1: i32) -> (i32, i32) {
    %c0_i32 = arith.constant 0 : i32
    return %arg0, %arg1 : i32, i32
  }
}

</mosaic_0001>

<bundles_post_ra>
// kernel: tpu_custom_call.1
= control target key start
LH: loop header
LB: loop body
LE: loop exit
PB: predicated region body
PF: predicated region fallthrough
CT: control target
= control target key end

     0   :  { %6 = vsyncpa [#allocation3], 0  ;;  %s121_s0 = inlined_call_operand.hbm [shape: f32[1,256], index: 0, kind: input, shape index: {}]   ;;  %s122_s1 = inlined_call_operand.hbm [shape: f32[2,256], index: 1, kind: output, shape index: {}]  }
   0x1   :  { %7 = vsyncpa [#allocation4], 0  ;;  %s103_s6 = smov [#allocation2]  }
   0x2   :  { %s14_s7 = sshll.u32 %s103_s6, 4  ;;  %s15_s7 = int_to_ptr.vmem [resolvable:$true] %s14_s7 }
   0x3   :  { %s67_s8 = scalar_lea.vmem %s15_s7, 32  ;;  %p72_p1 = scmp.lt.s32.totalorder %s15_s7, %s15_s7 }
   0x4   :  { %p68_p0 = scmp.ne.s32.totalorder %s15_s7, %s67_s8  ;;  %p73_p2 = scmp.lt.s32.totalorder %s67_s8, %s67_s8 }
   0x6   :  { %p74_p3 = por %p73_p2, %p72_p1 }
   0x8   :  { %p75_p4 = pnand %p74_p3, %p68_p0 }
   0xa   :  { %78 = shalt.err (!%p75_p4)
}
   0xb   :  { %17 = dma.hbm_to_vmem [thread:$0]  %s121_s0, 32, %s15_s7, [#allocation3]  }
   0xc   :  { %99 = dma.done.wait [#allocation3], 32  }
   0xd   :  { %100 = vsyncadd [#allocation3], 4294967264  ;;  %v23_v0 = vlaneseq  ;;  %v21_v4 = vld [vmem:[#allocation2] sm:$0x3]  ;;  %s104_s11 = smov [#allocation5]  }
   0xe   :  { %s47_s12 = sshll.u32 %s104_s11, 4  ;;  %s48_s12 = int_to_ptr.vmem [resolvable:$true] %s47_s12 }
   0xf   :  { %v24_v1 = vshrl.u32 %v23_v0, 7  ;;  %s79_s13 = scalar_lea.vmem %s48_s12, 64  ;;  %p84_p6 = scmp.lt.s32.totalorder %s48_s12, %s48_s12 }
  0x10   :  { %p80_p5 = scmp.ne.s32.totalorder %s48_s12, %s79_s13  ;;  %p85_p7 = scmp.lt.s32.totalorder %s79_s13, %s79_s13 }
  0x11   :  { %v25_v2 = vsub.s32 0, %v24_v1  ;;  %v29_v3 = vsub.s32 1, %v24_v1 }
  0x12   :  { %p86_p8 = por %p85_p7, %p84_p6 }
  0x13   :  { %v26_v5 = vrot.slane %v21_v4, %v25_v2  ;;  %v30_v6 = vrot.slane %v21_v4, %v29_v3 }
  0x14   :  { %p87_p9 = pnand %p86_p8, %p80_p5 }
  0x15   :  { %v31_v7 = vcombine.low %v26_v5, %v30_v6 }
  0x17   :  { %56 = vst.sshfl [vmem:[#allocation5] sm:$0x33 pattern:$0x76325410] %v31_v7 }
  0x18   :  { %90 = shalt.err (!%p87_p9)
}
  0x19   :  { %50 = dma.vmem_to_hbm [thread:$0]  %s48_s12, 64, %s122_s1, [#allocation4]  }
  0x1a   :  { %101 = dma.done.wait [#allocation4], 64  }
  0x1b   :  { %102 = vsyncadd [#allocation4], 4294967232 }
  0x1c   :  { %54 = vsyncpa [#allocation3], 1 }
  0x1d   :  { %55 = vsyncpa [#allocation4], 1 }

</bundles_post_ra>
